<compile_context>
chip_gen: v5e
topology: v5e:2x2
jax: 0.10.0
libtpu: 0.0.40
codegen_flags: <defaults>
</compile_context>

<pallas_src>
import functools

import jax
import jax.numpy as jnp
from jax import lax
from jax.experimental import pallas as pl
from jax.experimental.pallas import tpu as pltpu


def _round_up(a: int, b: int) -> int:
    return (a + b - 1) // b * b


# --------------------------------------------------------------------------
# Kernel body: one (seq_tile, H) x (H, n_tile) tile -> fused bias + activation
# --------------------------------------------------------------------------
def _bert_intermediate_kernel(x_ref, w_ref, b_ref, o_ref, *, act: str):
    # x_ref: (TS, H), w_ref: (H, TN), b_ref: (1, TN), o_ref: (TS, TN)
    x = jnp.dot(x_ref[...], w_ref[...], preferred_element_type=jnp.float32)
    x = x + b_ref[...].astype(jnp.float32)

    if act == "gelu_tanh":
        # tanh-approximate GELU (HF "gelu_new"/"gelu_pytorch_tanh").
        # sqrt(2/pi) folded into the polynomial: one fewer VALU multiply;
        # tanh lowers to the EUP (otherwise-idle VLIW slot).
        k_alpha = 0.7978845608028654            # sqrt(2/pi)
        k_beta = k_alpha * 0.044715
        inner = x * (k_alpha + k_beta * (x * x))
        y = 0.5 * x * (1.0 + jnp.tanh(inner))
    elif act == "gelu":
        # exact erf-based GELU (PyTorch nn.GELU default). Note: on v5e this is
        # a long VPU polynomial; prefer "gelu_tanh" there.
        y = 0.5 * x * (1.0 + lax.erf(x * 0.7071067811865476))
    elif act == "relu":
        y = jnp.maximum(x, 0.0)
    else:
        raise ValueError(f"unsupported activation: {act}")

    o_ref[...] = y.astype(o_ref.dtype)


# --------------------------------------------------------------------------
# Tiling / VMEM heuristics
# --------------------------------------------------------------------------
def _vmem_budget_bytes() -> int:
    """Per-generation VMEM budget (leave headroom under physical capacity)."""
    try:
        cap = int(pltpu.get_tpu_info().vmem_capacity_bytes)
        if cap > 0:
            # ~75%: ≈96 MiB on 128 MiB chips (v5e/v6e), ≈48 MiB on v7x (64 MiB).
            return min((cap * 3) // 4, 100 << 20)
    except Exception:
        pass
    return 48 << 20  # conservative: valid on every generation


def _vmem_need(ts: int, tn: int, H: int, x_bytes: int, w_bytes: int,
               o_bytes: int) -> int:
    return (2 * ts * H * x_bytes        # x tiles (double buffered)
            + 2 * H * tn * w_bytes      # weight (conservatively double buffered)
            + 2 * tn * 4                # bias (f32)
            + 2 * ts * tn * o_bytes     # output tiles (double buffered)
            + 3 * ts * tn * 4)          # in-kernel f32 dot result + act temps


def _pick_seq_tile(S: int, sublane: int, max_tile: int) -> int:
    """Largest tile with low pad waste; prefer >=2 grid steps (v7x megacore)."""
    s_ceil = _round_up(S, sublane)
    cands = [c for c in (512, 384, 256, 192, 128, 96, 64, 48, 32, 16, 8)
             if c % sublane == 0 and c <= min(max_tile, s_ceil)]
    if not cands:
        return s_ceil
    for want_steps in (2, 1):
        for c in cands:
            s_pad = _round_up(S, c)
            waste = (s_pad - S) / s_pad
            if waste <= 0.125 and s_pad // c >= want_steps:
                return c
    return cands[-1]


def _choose_tiles(S, H, I, x_bytes, w_bytes, o_bytes, sublane, budget):
    max_tile = 512 if budget >= (64 << 20) else 256
    seq0 = _pick_seq_tile(S, sublane, max_tile)

    seq_cands, s = [], seq0
    while s >= sublane:
        if s % sublane == 0:
            seq_cands.append(s)
        s //= 2
    if not seq_cands or seq_cands[-1] != sublane:
        seq_cands.append(sublane)

    n_cands = [I]
    if I % 128 == 0:
        n_cands += [tn for tn in (4096, 2048, 1024, 512, 256, 128)
                    if tn < I and I % tn == 0]

    for ts in seq_cands:
        for tn in n_cands:
            if _vmem_need(ts, tn, H, x_bytes, w_bytes, o_bytes) <= budget:
                return ts, tn
    return seq_cands[-1], n_cands[-1]


# --------------------------------------------------------------------------
# Wrapper
# --------------------------------------------------------------------------
def bert_intermediate(hidden_states, weight_t, bias, *, act: str = "gelu_tanh",
                      out_dtype=None, use_bf16_matmul: bool = True,
                      single_buffer_resident: bool = True):
    """hidden_states: (S, H); weight_t: (H, I) (= PyTorch weight.T); bias: (I,)."""
    S, H = hidden_states.shape
    H_w, I = weight_t.shape
    assert H_w == H, (H_w, H)
    assert bias.shape == (I,)

    out_dtype = jnp.dtype(hidden_states.dtype if out_dtype is None else out_dtype)

    if use_bf16_matmul:
        # bf16 operands for the MXU fast path; accumulation / bias / activation
        # stay f32 inside the kernel.
        hidden_states = hidden_states.astype(jnp.bfloat16)
        weight_t = weight_t.astype(jnp.bfloat16)

    x_bytes = hidden_states.dtype.itemsize
    w_bytes = weight_t.dtype.itemsize
    o_bytes = out_dtype.itemsize

    # bf16 native tiling is (16, 128): round sequence tiles to 16 in that case.
    sublane = 16 if hidden_states.dtype == jnp.bfloat16 else 8

    budget = _vmem_budget_bytes()
    seq_tile, n_tile = _choose_tiles(S, H, I, x_bytes, w_bytes, o_bytes,
                                     sublane, budget)

    S_pad = _round_up(S, seq_tile)
    if S_pad != S:
        # Padded rows evaluate to act(bias) and are sliced off below.
        hidden_states = jnp.pad(hidden_states, ((0, S_pad - S), (0, 0)))

    bias2 = bias.reshape(1, I).astype(jnp.float32)

    n_i = S_pad // seq_tile
    n_j = I // n_tile

    vmem_need = _vmem_need(seq_tile, n_tile, H, x_bytes, w_bytes, o_bytes)
    vmem_limit = int(min(budget, max(vmem_need + (4 << 20), 32 << 20)))

    w_reads = 1 if n_j == 1 else n_i   # resident weight vs. re-streamed per row tile
    cost = pl.CostEstimate(
        flops=2 * S_pad * H * I,
        transcendentals=(S_pad * I) if act in ("gelu", "gelu_tanh") else 0,
        bytes_accessed=(S_pad * H * x_bytes + w_reads * H * I * w_bytes
                        + I * 4 + S_pad * I * o_bytes),
    )

    kernel = functools.partial(_bert_intermediate_kernel, act=act)

    def _build(use_buffered: bool):
        # Single-buffer operands with a constant block index (weight & bias
        # stay resident in VMEM): saves a full extra copy of W.
        resident_kw = {"pipeline_mode": pl.Buffered(1)} if use_buffered else {}
        grid_spec = pltpu.PrefetchScalarGridSpec(
            num_scalar_prefetch=0,
            grid=(n_i, n_j),
            in_specs=[
                pl.BlockSpec((seq_tile, H), lambda i, j: (i, 0)),              # x tile
                pl.BlockSpec((H, n_tile), lambda i, j: (0, j), **resident_kw),  # weight
                pl.BlockSpec((1, n_tile), lambda i, j: (0, j), **resident_kw),  # bias
            ],
            out_specs=pl.BlockSpec((seq_tile, n_tile), lambda i, j: (i, j)),
        )
        return pl.pallas_call(
            kernel,
            out_shape=jax.ShapeDtypeStruct((S_pad, I), out_dtype),
            grid_spec=grid_spec,
            compiler_params=pltpu.CompilerParams(
                dimension_semantics=("parallel", "parallel"),
                vmem_limit_bytes=vmem_limit,
            ),
            cost_estimate=cost,
        )

    buffer_once = (single_buffer_resident and n_j == 1 and hasattr(pl, "Buffered"))

    out = None
    if buffer_once:
        try:
            out = _build(True)(hidden_states, weight_t, bias2)
            out = jax.block_until_ready(out)
        except Exception:
            out = None  # toolchain rejected pipeline_mode; use default buffering
    if out is None:
        out = _build(False)(hidden_states, weight_t, bias2)

    return out[:S] if S_pad != S else out


# --------------------------------------------------------------------------
# Pure-JAX reference
# --------------------------------------------------------------------------
def bert_intermediate_ref(hidden_states, weight_t, bias, *, act: str = "gelu_tanh",
                          cast_bf16: bool = False):
    x, w = hidden_states, weight_t
    if cast_bf16:
        x = x.astype(jnp.bfloat16)
        w = w.astype(jnp.bfloat16)
    y = jnp.dot(x, w, preferred_element_type=jnp.float32) + bias.astype(jnp.float32)
    if act == "gelu_tanh":
        y = jax.nn.gelu(y, approximate=True)
    elif act == "gelu":
        y = jax.nn.gelu(y, approximate=False)
    elif act == "relu":
        y = jnp.maximum(y, 0.0)
    else:
        raise ValueError(act)
    return y.astype(hidden_states.dtype)


if __name__ == "__main__":
    # Small BERT-like sizes: seq=16, hidden=128, intermediate=512
    S, H, I = 16, 128, 512

    key = jax.random.PRNGKey(0)
    k1, k2, k3 = jax.random.split(key, 3)

    hidden_states = jax.random.normal(k1, (S, H), dtype=jnp.float32)
    # PyTorch nn.Linear weight is (I, H); we pass its transpose (H, I).
    weight_t = jax.random.normal(k2, (H, I), dtype=jnp.float32) * 0.02
    bias = jax.random.normal(k3, (I,), dtype=jnp.float32) * 0.02

    # Exercise the optimized path: bf16 matmul operands and bf16 output
    # (the downstream BertOutput matmul consumes bf16).
    out = bert_intermediate(hidden_states, weight_t, bias, act="gelu_tanh",
                            out_dtype=jnp.bfloat16, use_bf16_matmul=True)
    out = jax.block_until_ready(out)
    assert out.shape == (S, I), out.shape
    assert out.dtype == jnp.bfloat16, out.dtype

    out_f32 = out.astype(jnp.float32)

    # Loose check against full-f32 module semantics (bf16 rounding on inputs/output).
    ref_f32 = bert_intermediate_ref(hidden_states, weight_t, bias, act="gelu_tanh")
    err_f32 = jnp.max(jnp.abs(out_f32 - ref_f32.astype(jnp.float32)))
    assert err_f32 < 4e-2, f"max err vs f32 ref {err_f32}"

    # Tight check against a bf16-consistent reference (same MXU precision).
    ref_bf16 = bert_intermediate_ref(hidden_states, weight_t, bias,
                                     act="gelu_tanh", cast_bf16=True)
    err_bf16 = jnp.max(jnp.abs(out_f32 - ref_bf16.astype(jnp.float32)))
    assert err_bf16 < 1.5e-2, f"max err vs bf16 ref {err_bf16}"

    print("KERNEL_OK")
</pallas_src>

<mosaic_0001>
module attributes {stable_mosaic.version = 11 : i64} {
  func.func @_bert_intermediate_kernel(%arg0: i32, %arg1: i32, %arg2: memref<16x128xbf16, #tpu.memory_space<vmem>>, %arg3: memref<128x512xbf16, #tpu.memory_space<vmem>>, %arg4: memref<1x512xf32, #tpu.memory_space<vmem>>, %arg5: memref<16x512xbf16, #tpu.memory_space<vmem>>) attributes {dimension_semantics = [#tpu.dimension_semantics<parallel>, #tpu.dimension_semantics<parallel>], iteration_bounds = array<i64: 1, 1>, scalar_prefetch = 0 : i64, scratch_operands = 0 : i64, tpu.core_type = #tpu.core_type<tc>, window_params = [{transform_indices = @transform_0, window_bounds = array<i64: 16, 128>}, {pipeline_mode = #tpu.pipeline_mode<synchronous>, transform_indices = @transform_1, window_bounds = array<i64: 128, 512>}, {pipeline_mode = #tpu.pipeline_mode<synchronous>, transform_indices = @transform_2, window_bounds = array<i64: 1, 512>}, {transform_indices = @transform_3, window_bounds = array<i64: 16, 512>}]} {
    %c0 = arith.constant 0 : index
    %c0_0 = arith.constant 0 : index
    %0 = vector.load %arg2[%c0, %c0_0] : memref<16x128xbf16, #tpu.memory_space<vmem>>, vector<16x128xbf16>
    %c0_1 = arith.constant 0 : index
    %c0_2 = arith.constant 0 : index
    %1 = vector.load %arg3[%c0_1, %c0_2] : memref<128x512xbf16, #tpu.memory_space<vmem>>, vector<128x512xbf16>
    %cst = arith.constant dense<0.000000e+00> : vector<16x512xf32>
    %2 = tpu.matmul %0, %1, %cst {dimension_numbers = #tpu.dot_dimension_numbers<[1], [0], [0], [1], [0, 0, 1, 1], [], []>} : vector<16x128xbf16>, vector<128x512xbf16>, vector<16x512xf32> -> vector<16x512xf32>
    %c0_3 = arith.constant 0 : index
    %c0_4 = arith.constant 0 : index
    %3 = vector.load %arg4[%c0_3, %c0_4] : memref<1x512xf32, #tpu.memory_space<vmem>>, vector<1x512xf32>
    %4 = vector.broadcast %3 : vector<1x512xf32> to vector<16x512xf32>
    %5 = arith.addf %2, %4 : vector<16x512xf32>
    %6 = arith.mulf %5, %5 : vector<16x512xf32>
    %cst_5 = arith.constant 0.0356774069 : f32
    %7 = vector.broadcast %cst_5 : f32 to vector<16x512xf32>
    %8 = arith.mulf %7, %6 : vector<16x512xf32>
    %cst_6 = arith.constant 0.797884583 : f32
    %9 = vector.broadcast %cst_6 : f32 to vector<16x512xf32>
    %10 = arith.addf %9, %8 : vector<16x512xf32>
    %11 = arith.mulf %5, %10 : vector<16x512xf32>
    %cst_7 = arith.constant 5.000000e-01 : f32
    %12 = vector.broadcast %cst_7 : f32 to vector<16x512xf32>
    %13 = arith.mulf %12, %5 : vector<16x512xf32>
    %14 = math.tanh %11 : vector<16x512xf32>
    %cst_8 = arith.constant 1.000000e+00 : f32
    %15 = vector.broadcast %cst_8 : f32 to vector<16x512xf32>
    %16 = arith.addf %15, %14 : vector<16x512xf32>
    %17 = arith.mulf %13, %16 : vector<16x512xf32>
    %18 = arith.truncf %17 : vector<16x512xf32> to vector<16x512xbf16>
    %c0_9 = arith.constant 0 : index
    %c0_10 = arith.constant 0 : index
    %19 = vector.load %arg5[%c0_9, %c0_10] : memref<16x512xbf16, #tpu.memory_space<vmem>>, vector<16x512xbf16>
    tpu.vector_store %arg5[%c0_9, %c0_10], %18 {strides = array<i32>} : memref<16x512xbf16, #tpu.memory_space<vmem>>, vector<16x512xbf16>,
    return
  }
  func.func @transform_0(%arg0: i32, %arg1: i32) -> (i32, i32) {
    %c0_i32 = arith.constant 0 : i32
    %c0_i32_0 = arith.constant 0 : i32
    return %arg0, %c0_i32 : i32, i32
  }
  func.func @transform_1(%arg0: i32, %arg1: i32) -> (i32, i32) {
    %c0_i32 = arith.constant 0 : i32
    %c0_i32_0 = arith.constant 0 : i32
    return %c0_i32, %arg1 : i32, i32
  }
  func.func @transform_2(%arg0: i32, %arg1: i32) -> (i32, i32) {
    %c0_i32 = arith.constant 0 : i32
    %c0_i32_0 = arith.constant 0 : i32
    return %c0_i32, %arg1 : i32, i32
  }
  func.func @transform_3(%arg0: i32, %arg1: i32) -> (i32, i32) {
    %c0_i32 = arith.constant 0 : i32
    return %arg0, %arg1 : i32, i32
  }
}

module attributes {stable_mosaic.version = 11 : i64} {
  func.func @_bert_intermediate_kernel(%arg0: i32, %arg1: i32, %arg2: memref<16x128xbf16, #tpu.memory_space<vmem>>, %arg3: memref<128x512xbf16, #tpu.memory_space<vmem>>, %arg4: memref<1x512xf32, #tpu.memory_space<vmem>>, %arg5: memref<16x512xbf16, #tpu.memory_space<vmem>>) attributes {dimension_semantics = [#tpu.dimension_semantics<parallel>, #tpu.dimension_semantics<parallel>], iteration_bounds = array<i64: 1, 1>, scalar_prefetch = 0 : i64, scratch_operands = 0 : i64, tpu.core_type = #tpu.core_type<tc>, window_params = [{transform_indices = @transform_0, window_bounds = array<i64: 16, 128>}, {transform_indices = @transform_1, window_bounds = array<i64: 128, 512>}, {transform_indices = @transform_2, window_bounds = array<i64: 1, 512>}, {transform_indices = @transform_3, window_bounds = array<i64: 16, 512>}]} {
    %c0 = arith.constant 0 : index
    %c0_0 = arith.constant 0 : index
    %0 = vector.load %arg2[%c0, %c0_0] : memref<16x128xbf16, #tpu.memory_space<vmem>>, vector<16x128xbf16>
    %c0_1 = arith.constant 0 : index
    %c0_2 = arith.constant 0 : index
    %1 = vector.load %arg3[%c0_1, %c0_2] : memref<128x512xbf16, #tpu.memory_space<vmem>>, vector<128x512xbf16>
    %cst = arith.constant dense<0.000000e+00> : vector<16x512xf32>
    %2 = tpu.matmul %0, %1, %cst {dimension_numbers = #tpu.dot_dimension_numbers<[1], [0], [0], [1], [0, 0, 1, 1], [], []>} : vector<16x128xbf16>, vector<128x512xbf16>, vector<16x512xf32> -> vector<16x512xf32>
    %c0_3 = arith.constant 0 : index
    %c0_4 = arith.constant 0 : index
    %3 = vector.load %arg4[%c0_3, %c0_4] : memref<1x512xf32, #tpu.memory_space<vmem>>, vector<1x512xf32>
    %4 = vector.broadcast %3 : vector<1x512xf32> to vector<16x512xf32>
    %5 = arith.addf %2, %4 : vector<16x512xf32>
    %6 = arith.mulf %5, %5 : vector<16x512xf32>
    %cst_5 = arith.constant 0.0356774069 : f32
    %7 = vector.broadcast %cst_5 : f32 to vector<16x512xf32>
    %8 = arith.mulf %7, %6 : vector<16x512xf32>
    %cst_6 = arith.constant 0.797884583 : f32
    %9 = vector.broadcast %cst_6 : f32 to vector<16x512xf32>
    %10 = arith.addf %9, %8 : vector<16x512xf32>
    %11 = arith.mulf %5, %10 : vector<16x512xf32>
    %cst_7 = arith.constant 5.000000e-01 : f32
    %12 = vector.broadcast %cst_7 : f32 to vector<16x512xf32>
    %13 = arith.mulf %12, %5 : vector<16x512xf32>
    %14 = math.tanh %11 : vector<16x512xf32>
    %cst_8 = arith.constant 1.000000e+00 : f32
    %15 = vector.broadcast %cst_8 : f32 to vector<16x512xf32>
    %16 = arith.addf %15, %14 : vector<16x512xf32>
    %17 = arith.mulf %13, %16 : vector<16x512xf32>
    %18 = arith.truncf %17 : vector<16x512xf32> to vector<16x512xbf16>
    %c0_9 = arith.constant 0 : index
    %c0_10 = arith.constant 0 : index
    %19 = vector.load %arg5[%c0_9, %c0_10] : memref<16x512xbf16, #tpu.memory_space<vmem>>, vector<16x512xbf16>
    tpu.vector_store %arg5[%c0_9, %c0_10], %18 {strides = array<i32>} : memref<16x512xbf16, #tpu.memory_space<vmem>>, vector<16x512xbf16>,
    return
  }
  func.func @transform_0(%arg0: i32, %arg1: i32) -> (i32, i32) {
    %c0_i32 = arith.constant 0 : i32
    %c0_i32_0 = arith.constant 0 : i32
    return %arg0, %c0_i32 : i32, i32
  }
  func.func @transform_1(%arg0: i32, %arg1: i32) -> (i32, i32) {
    %c0_i32 = arith.constant 0 : i32
    %c0_i32_0 = arith.constant 0 : i32
    return %c0_i32, %arg1 : i32, i32
  }
  func.func @transform_2(%arg0: i32, %arg1: i32) -> (i32, i32) {
    %c0_i32 = arith.constant 0 : i32
    %c0_i32_0 = arith.constant 0 : i32
    return %c0_i32, %arg1 : i32, i32
  }
  func.func @transform_3(%arg0: i32, %arg1: i32) -> (i32, i32) {
    %c0_i32 = arith.constant 0 : i32
    return %arg0, %arg1 : i32, i32
  }
}

</mosaic_0001>

<bundles_post_ra>
// kernel: tpu_custom_call.1
= control target key start
LH: loop header
LB: loop body
LE: loop exit
PB: predicated region body
PF: predicated region fallthrough
CT: control target
= control target key end

     0   :  { %8 = vsyncpa [#allocation3], 0  ;;  %s755_s0 = inlined_call_operand.hbm [shape: bf16[16,128], index: 0, kind: input, shape index: {}]   ;;  %s756_s1 = inlined_call_operand.hbm [shape: bf16[128,512], index: 1, kind: input, shape index: {}]   ;;  %s757_s2 = inlined_call_operand.hbm [shape: f32[1,512], index: 2, kind: input, shape index: {}]   ;;  %s758_s3 = inlined_call_operand.hbm [shape: bf16[16,512], index: 3, kind: output, shape index: {}]  }
   0x1   :  { %9 = vsyncpa [#allocation6], 0  ;;  %s28_s14 = sshll.u32 %s756_s1, 4  ;;  %s29_s14 = int_to_ptr.hbm [resolvable:$true] %s28_s14 }
   0x2   :  { %10 = vsyncpa [#allocation4], 0  ;;  %s709_s15 = smov [#allocation5]   ;;  %s15_s19 = sshll.u32 %s755_s0, 4  ;;  %s16_s19 = int_to_ptr.hbm [resolvable:$true] %s15_s19 }
   0x3   :  { %s30_s16 = sshll.u32 %s709_s15, 4  ;;  %s710_s20 = smov 256   ;;  %s31_s16 = int_to_ptr.vmem [resolvable:$true] %s30_s16 }
   0x4   :  { %s711_s21 = smov 16   ;;  %s712_s22 = smov [#allocation2]  }
   0x5   :  { %36 = dma.hbm_to_vmem [thread:$0]  %s29_s14, 4096, %s31_s16, [#allocation6], %s710_s20, %s710_s20, %s711_s21  }
   0x6   :  { %s17_s23 = sshll.u32 %s712_s22, 4  ;;  %s713_s1 = smov 64   ;;  %s18_s23 = int_to_ptr.vmem [resolvable:$true] %s17_s23 }
   0x7   :  { %s714_s24 = smov 4   ;;  %s42_s27 = sshll.u32 %s757_s2, 4  ;;  %s43_s27 = int_to_ptr.hbm [resolvable:$true] %s42_s27 }
   0x8   :  { %23 = dma.hbm_to_vmem [thread:$0]  %s16_s19, 128, %s18_s23, [#allocation3], %s713_s1, %s713_s1, %s714_s24  }
   0x9   :  { %s715_s28 = smov [#allocation7]  }
   0xa   :  { %s44_s0 = sshll.u32 %s715_s28, 4  ;;  %s45_s0 = int_to_ptr.vmem [resolvable:$true] %s44_s0 }
   0xb   :  { %47 = dma.hbm_to_vmem [thread:$0]  %s43_s27, 64, %s45_s0, [#allocation6]  }
   0xc   :  { %703 = dma.done.wait [#allocation3], 128  }
   0xd   :  { %704 = vsyncadd [#allocation3], 4294967168 }
   0xe   :  { %705 = dma.done.wait [#allocation6], 4160  }
   0xf   :  { %706 = vsyncadd [#allocation6], 4294963136  ;;  %v536_v0 = vld [vmem:[#allocation5 + $0xe0] sm:$0xf]  ;;  %v581_v1 = vld [vmem:[#allocation5 + $0xec] sm:$0xf0] }
  0x10   :  { %v579_v2 = vld [vmem:[#allocation5 + $0xe4] sm:$0xf]  ;;  %v537_v3 = vor.u32 %v581_v1, %v536_v0  ;;  %v538_v4 = vld [vmem:[#allocation5 + $0xf0] sm:$0xf0]  ;;  %v544_v5 = vld [vmem:[#allocation5 + $0xe8] sm:$0xf] }
  0x11   :  { %v582_v6 = vld [vmem:[#allocation5 + $0xf4] sm:$0xf0]  ;;  %v541_v7 = vor.u32 %v579_v2, %v538_v4  ;;  %v580_v9 = vld [vmem:[#allocation5 + $0xec] sm:$0xf]  ;;  %v546_v10 = vld [vmem:[#allocation5 + $0xf8] sm:$0xf0] }
  0x12   :  { %v545_v8 = vor.u32 %v582_v6, %v544_v5  ;;  %v520_v11 = vld [vmem:[#allocation5 + $0xc0] sm:$0xf]  ;;  %270 = vmatpush.bf16.msra.mxu0 %v537_v3  ;;  %v549_v12 = vor.u32 %v580_v9, %v546_v10  ;;  %v577_v13 = vld [vmem:[#allocation5 + $0xcc] sm:$0xf0]  ;;  %v575_v14 = vld [vmem:[#allocation5 + $0xc4] sm:$0xf] }
  0x13   :  { %v522_v15 = vld [vmem:[#allocation5 + $0xd0] sm:$0xf0]  ;;  %284 = vmatpush.bf16.msra.mxu1 %v541_v7  ;;  %v521_v16 = vor.u32 %v577_v13, %v520_v11  ;;  %v528_v18 = vld [vmem:[#allocation5 + $0xc8] sm:$0xf]  ;;  %v578_v19 = vld [vmem:[#allocation5 + $0xd4] sm:$0xf0] }
  0x14   :  { %298 = vmatpush.bf16.msra.mxu2 %v545_v8  ;;  %v525_v17 = vor.u32 %v575_v14, %v522_v15  ;;  %v576_v20 = vld [vmem:[#allocation5 + $0xcc] sm:$0xf]  ;;  %312 = vmatpush.bf16.msra.mxu3 %v549_v12  ;;  %v529_v21 = vor.u32 %v578_v19, %v528_v18  ;;  %v530_v22 = vld [vmem:[#allocation5 + $0xd8] sm:$0xf0]  ;;  %v504_v23 = vld [vmem:[#allocation5 + $0xa0] sm:$0xf] }
  0x15   :  { %v573_v24 = vld [vmem:[#allocation5 + $0xac] sm:$0xf0]  ;;  %v533_v25 = vor.u32 %v576_v20, %v530_v22  ;;  %v571_v26 = vld [vmem:[#allocation5 + $0xa4] sm:$0xf]  ;;  %v506_v27 = vld [vmem:[#allocation5 + $0xb0] sm:$0xf0] }
  0x16   :  { %v512_v28 = vld [vmem:[#allocation5 + $0xa8] sm:$0xf]  ;;  %271 = vmatpush.bf16.msra.mxu0 %v521_v16  ;;  %v505_v29 = vor.u32 %v573_v24, %v504_v23  ;;  %v574_v30 = vld [vmem:[#allocation5 + $0xb4] sm:$0xf0]  ;;  %v572_v31 = vld [vmem:[#allocation5 + $0xac] sm:$0xf]  ;;  %v509_v33 = vor.u32 %v571_v26, %v506_v27 }
  0x17   :  { %v514_v32 = vld [vmem:[#allocation5 + $0xb8] sm:$0xf0]  ;;  %285 = vmatpush.bf16.msra.mxu1 %v525_v17  ;;  %v513_v34 = vor.u32 %v574_v30, %v512_v28  ;;  %v488_v35 = vld [vmem:[#allocation5 + $0x80] sm:$0xf]  ;;  %v569_v36 = vld [vmem:[#allocation5 + $0x8c] sm:$0xf0] }
  0x18   :  { %299 = vmatpush.bf16.msra.mxu2 %v529_v21  ;;  %v567_v37 = vld [vmem:[#allocation5 + $0x84] sm:$0xf]  ;;  %313 = vmatpush.bf16.msra.mxu3 %v533_v25  ;;  %v517_v38 = vor.u32 %v572_v31, %v514_v32  ;;  %v490_v39 = vld [vmem:[#allocation5 + $0x90] sm:$0xf0]  ;;  %v496_v40 = vld [vmem:[#allocation5 + $0x88] sm:$0xf]  ;;  %v489_v44 = vor.u32 %v569_v36, %v488_v35 }
  0x19   :  { %v570_v41 = vld [vmem:[#allocation5 + $0x94] sm:$0xf0]  ;;  %v568_v42 = vld [vmem:[#allocation5 + $0x8c] sm:$0xf]  ;;  %v498_v43 = vld [vmem:[#allocation5 + $0x98] sm:$0xf0]  ;;  %v493_v45 = vor.u32 %v567_v37, %v490_v39 }
  0x1a   :  { %272 = vmatpush.bf16.msra.mxu0 %v505_v29  ;;  %v497_v46 = vor.u32 %v570_v41, %v496_v40  ;;  %v472_v47 = vld [vmem:[#allocation5 + $0x60] sm:$0xf]  ;;  %v565_v48 = vld [vmem:[#allocation5 + $0x6c] sm:$0xf0]  ;;  %v563_v49 = vld [vmem:[#allocation5 + $0x64] sm:$0xf]  ;;  %v501_v50 = vor.u32 %v568_v42, %v498_v43 }
  0x1b   :  { %286 = vmatpush.bf16.msra.mxu1 %v509_v33  ;;  %v474_v51 = vld [vmem:[#allocation5 + $0x70] sm:$0xf0]  ;;  %v480_v52 = vld [vmem:[#allocation5 + $0x68] sm:$0xf]  ;;  %v566_v53 = vld [vmem:[#allocation5 + $0x74] sm:$0xf0]  ;;  %v473_v56 = vor.u32 %v565_v48, %v472_v47 }
  0x1c   :  { %300 = vmatpush.bf16.msra.mxu2 %v513_v34  ;;  %314 = vmatpush.bf16.msra.mxu3 %v517_v38  ;;  %v564_v54 = vld [vmem:[#allocation5 + $0x6c] sm:$0xf]  ;;  %v482_v55 = vld [vmem:[#allocation5 + $0x78] sm:$0xf0]  ;;  %v477_v57 = vor.u32 %v563_v49, %v474_v51  ;;  %v481_v58 = vor.u32 %v566_v53, %v480_v52  ;;  %v456_v59 = vld [vmem:[#allocation5 + $0x40] sm:$0xf] }
  0x1d   :  { %v561_v60 = vld [vmem:[#allocation5 + $0x4c] sm:$0xf0]  ;;  %v559_v61 = vld [vmem:[#allocation5 + $0x44] sm:$0xf]  ;;  %v485_v62 = vor.u32 %v564_v54, %v482_v55  ;;  %v458_v63 = vld [vmem:[#allocation5 + $0x50] sm:$0xf0] }
  0x1e   :  { %273 = vmatpush.bf16.msra.mxu0 %v489_v44  ;;  %v464_v0 = vld [vmem:[#allocation5 + $0x48] sm:$0xf]  ;;  %v562_v1 = vld [vmem:[#allocation5 + $0x54] sm:$0xf0]  ;;  %v560_v2 = vld [vmem:[#allocation5 + $0x4c] sm:$0xf]  ;;  %v457_v4 = vor.u32 %v561_v60, %v456_v59  ;;  %v461_v5 = vor.u32 %v559_v61, %v458_v63 }
  0x1f   :  { %287 = vmatpush.bf16.msra.mxu1 %v493_v45  ;;  %v466_v3 = vld [vmem:[#allocation5 + $0x58] sm:$0xf0]  ;;  %v465_v6 = vor.u32 %v562_v1, %v464_v0  ;;  %v440_v7 = vld [vmem:[#allocation5 + $0x20] sm:$0xf]  ;;  %v557_v8 = vld [vmem:[#allocation5 + $0x2c] sm:$0xf0] }
  0x20   :  { %301 = vmatpush.bf16.msra.mxu2 %v497_v46  ;;  %315 = vmatpush.bf16.msra.mxu3 %v501_v50  ;;  %v555_v9 = vld [vmem:[#allocation5 + $0x24] sm:$0xf]  ;;  %v469_v10 = vor.u32 %v560_v2, %v466_v3  ;;  %v442_v11 = vld [vmem:[#allocation5 + $0x30] sm:$0xf0]  ;;  %v448_v12 = vld [vmem:[#allocation5 + $0x28] sm:$0xf]  ;;  %v441_v16 = vor.u32 %v557_v8, %v440_v7 }
  0x21   :  { %v558_v13 = vld [vmem:[#allocation5 + $0x34] sm:$0xf0]  ;;  %v556_v14 = vld [vmem:[#allocation5 + $0x2c] sm:$0xf]  ;;  %v450_v15 = vld [vmem:[#allocation5 + $0x38] sm:$0xf0]  ;;  %v445_v17 = vor.u32 %v555_v9, %v442_v11 }
  0x22   :  { %274 = vmatpush.bf16.msra.mxu0 %v473_v56  ;;  %v449_v18 = vor.u32 %v558_v13, %v448_v12  ;;  %v424_v19 = vld [vmem:[#allocation5] sm:$0xf]  ;;  %v553_v20 = vld [vmem:[#allocation5 + $0xc] sm:$0xf0]  ;;  %v551_v21 = vld [vmem:[#allocation5 + $0x4] sm:$0xf]  ;;  %v453_v22 = vor.u32 %v556_v14, %v450_v15 }
  0x23   :  { %288 = vmatpush.bf16.msra.mxu1 %v477_v57  ;;  %v426_v23 = vld [vmem:[#allocation5 + $0x10] sm:$0xf0]  ;;  %v432_v24 = vld [vmem:[#allocation5 + $0x8] sm:$0xf]  ;;  %v554_v25 = vld [vmem:[#allocation5 + $0x14] sm:$0xf0]  ;;  %v425_v28 = vor.u32 %v553_v20, %v424_v19 }
  0x24   :  { %302 = vmatpush.bf16.msra.mxu2 %v481_v58  ;;  %316 = vmatpush.bf16.msra.mxu3 %v485_v62  ;;  %v552_v26 = vld [vmem:[#allocation5 + $0xc] sm:$0xf]  ;;  %v434_v27 = vld [vmem:[#allocation5 + $0x18] sm:$0xf0]  ;;  %v429_v29 = vor.u32 %v551_v21, %v426_v23  ;;  %v433_v30 = vor.u32 %v554_v25, %v432_v24  ;;  %v94_v33 = vld [vmem:[#allocation7] sm:$0xf] }
  0x25   :  { %v437_v31 = vor.u32 %v552_v26, %v434_v27  ;;  %v550_v32 = vld [vmem:[#allocation2] sm:$0xff]  ;;  %v96_v34 = vperm.slane %v94_v33, 0  ;;  %v97_v35 = vperm.slane %v94_v33, 1  ;;  %v98_v42 = vperm.slane %v94_v33, 2  ;;  %s716_s2 = smov [#allocation8]   ;;  %s404_s5 = sshll.u32 %s758_s3, 4  ;;  %s405_s5 = int_to_ptr.hbm [resolvable:$true] %s404_s5 }
  0x26   :  { %275 = vmatpush.bf16.msra.mxu0 %v457_v4  ;;  %v99_v44 = vperm.slane %v94_v33, 3  ;;  %s402_s29 = sshll.u32 %s716_s2, 4  ;;  %s403_s29 = int_to_ptr.vmem [resolvable:$true] %s402_s29 }
  0x27   :  { %289 = vmatpush.bf16.msra.mxu1 %v461_v5 }
  0x28   :  { %303 = vmatpush.bf16.msra.mxu2 %v465_v6  ;;  %317 = vmatpush.bf16.msra.mxu3 %v469_v10 }
  0x2a   :  { %276 = vmatpush.bf16.msra.mxu0 %v441_v16 }
  0x2b   :  { %290 = vmatpush.bf16.msra.mxu1 %v445_v17 }
  0x2c   :  { %304 = vmatpush.bf16.msra.mxu2 %v449_v18  ;;  %318 = vmatpush.bf16.msra.mxu3 %v453_v22 }
  0x2e   :  { %277 = vmatpush.bf16.msra.mxu0 %v425_v28 }
  0x2f   :  { %291 = vmatpush.bf16.msra.mxu1 %v429_v29 }
  0x30   :  { %305 = vmatpush.bf16.msra.mxu2 %v433_v30  ;;  %319 = vmatpush.bf16.msra.mxu3 %v437_v31 }
  0x31   :  { %278 = vmatmul.bf16.vlgmr.msra.gmra.mxu0 %v550_v32 }
  0x32   :  { %292 = vmatmul.bf16.vlgmr.msra.gmra.mxu1 %v550_v32 }
  0x33   :  { %306 = vmatmul.bf16.vlgmr.msra.gmra.mxu2 %v550_v32  ;;  %320 = vmatmul.bf16.vlgmr.msra.gmra.mxu3 %v550_v32 }
  0xae   :  { %v279_v36 = vpop.f32.mrf.mxu0 }
  0xaf   :  { %v280_v37 = vadd.f32 %v279_v36, %v96_v34  ;;  %v293_v38 = vpop.f32.mrf.mxu1 }
  0xb0   :  { %v294_v39 = vadd.f32 %v293_v38, %v97_v35 }
  0xb1   :  { %v326_v40 = vmul.f32 %v280_v37, %v280_v37  ;;  %v358_v11 = vmul.f32 0.5, %v280_v37 }
  0xb2   :  { %v327_v41 = vmul.f32 %v294_v39, %v294_v39  ;;  %v359_v19 = vmul.f32 0.5, %v294_v39 }
  0xb3   :  { %v334_v43 = vmul.f32 0.035677407, %v326_v40 }
  0xb4   :  { %v335_v45 = vmul.f32 0.035677407, %v327_v41 }
  0xb5   :  { %v342_v46 = vadd.f32 0.7978846, %v334_v43 }
  0xb6   :  { %v307_v47 = vpop.f32.mrf.mxu2  ;;  %v343_v48 = vadd.f32 0.7978846, %v335_v45  ;;  %v321_v50 = vpop.f32.mrf.mxu3 }
  0xb7   :  { %v308_v49 = vadd.f32 %v307_v47, %v98_v42  ;;  %v281_v51 = vpop.f32.mrf.mxu0  ;;  %v350_v52 = vmul.f32 %v342_v46, %v280_v37  ;;  %v322_v53 = vadd.f32 %v321_v50, %v99_v44  ;;  %v295_v55 = vpop.f32.mrf.mxu1 }
  0xb8   :  { %v282_v54 = vadd.f32 %v281_v51, %v96_v34  ;;  %v351_v56 = vmul.f32 %v343_v48, %v294_v39  ;;  %v296_v58 = vadd.f32 %v295_v55, %v97_v35 }
  0xb9   :  { %v328_v57 = vmul.f32 %v308_v49, %v308_v49  ;;  %591 = vtanh.f32 %v350_v52  ;;  %v329_v59 = vmul.f32 %v322_v53, %v322_v53  ;;  %v360_v32 = vmul.f32 0.5, %v308_v49 }
  0xba   :  { %v330_v60 = vmul.f32 %v282_v54, %v282_v54  ;;  %593 = vtanh.f32 %v351_v56  ;;  %v331_v62 = vmul.f32 %v296_v58, %v296_v58  ;;  %v361_v36 = vmul.f32 0.5, %v322_v53 }
  0xbb   :  { %v336_v61 = vmul.f32 0.035677407, %v328_v57  ;;  %v337_v63 = vmul.f32 0.035677407, %v329_v59  ;;  %v362_v40 = vmul.f32 0.5, %v282_v54  ;;  %v363_v43 = vmul.f32 0.5, %v296_v58 }
  0xbc   :  { %v338_v0 = vmul.f32 0.035677407, %v330_v60  ;;  %v339_v2 = vmul.f32 0.035677407, %v331_v62 }
  0xbd   :  { %v344_v1 = vadd.f32 0.7978846, %v336_v61  ;;  %v345_v3 = vadd.f32 0.7978846, %v337_v63 }
  0xbe   :  { %v346_v4 = vadd.f32 0.7978846, %v338_v0  ;;  %v309_v5 = vpop.f32.mrf.mxu2  ;;  %v347_v7 = vadd.f32 0.7978846, %v339_v2  ;;  %v323_v9 = vpop.f32.mrf.mxu3 }
  0xbf   :  { %v352_v6 = vmul.f32 %v344_v1, %v308_v49  ;;  %v310_v8 = vadd.f32 %v309_v5, %v98_v42  ;;  %v592_v10 = vpop.eup %591  ;;  %v353_v12 = vmul.f32 %v345_v3, %v322_v53  ;;  %v324_v14 = vadd.f32 %v323_v9, %v99_v44 }
  0xc0   :  { %v354_v13 = vmul.f32 %v346_v4, %v282_v54  ;;  %v594_v15 = vpop.eup %593  ;;  %v374_v16 = vadd.f32 1.0, %v592_v10  ;;  %v355_v17 = vmul.f32 %v347_v7, %v296_v58 }
  0xc1   :  { %595 = vtanh.f32 %v352_v6  ;;  %v332_v18 = vmul.f32 %v310_v8, %v310_v8  ;;  %v375_v20 = vadd.f32 1.0, %v594_v15  ;;  %v333_v21 = vmul.f32 %v324_v14, %v324_v14 }
  0xc2   :  { %597 = vtanh.f32 %v353_v12  ;;  %v382_v22 = vmul.f32 %v374_v16, %v358_v11  ;;  %v364_v51 = vmul.f32 0.5, %v310_v8  ;;  %v365_v53 = vmul.f32 0.5, %v324_v14 }
  0xc3   :  { %599 = vtanh.f32 %v354_v13  ;;  %v340_v23 = vmul.f32 0.035677407, %v332_v18  ;;  %v383_v24 = vmul.f32 %v375_v20, %v359_v19  ;;  %v341_v25 = vmul.f32 0.035677407, %v333_v21 }
  0xc4   :  { %601 = vtanh.f32 %v355_v17 }
  0xc5   :  { %v348_v26 = vadd.f32 0.7978846, %v340_v23  ;;  %v390_v27 = vpack.c.bf16 %v383_v24, %v382_v22  ;;  %v349_v28 = vadd.f32 0.7978846, %v341_v25 }
  0xc7   :  { %v596_v29 = vpop.eup %595  ;;  %v356_v30 = vmul.f32 %v348_v26, %v310_v8  ;;  %394 = vst [vmem:[#allocation8] sm:$0xff] %v390_v27  ;;  %v357_v34 = vmul.f32 %v349_v28, %v324_v14 }
  0xc8   :  { %v598_v31 = vpop.eup %597  ;;  %v376_v33 = vadd.f32 1.0, %v596_v29 }
  0xc9   :  { %v600_v35 = vpop.eup %599  ;;  %v377_v37 = vadd.f32 1.0, %v598_v31  ;;  %603 = vtanh.f32 %v356_v30 }
  0xca   :  { %v602_v38 = vpop.eup %601  ;;  %v384_v39 = vmul.f32 %v376_v33, %v360_v32  ;;  %v378_v41 = vadd.f32 1.0, %v600_v35  ;;  %605 = vtanh.f32 %v357_v34 }
  0xcb   :  { %v385_v42 = vmul.f32 %v377_v37, %v361_v36  ;;  %v379_v44 = vadd.f32 1.0, %v602_v38 }
  0xcc   :  { %v386_v45 = vmul.f32 %v378_v41, %v362_v40 }
  0xcd   :  { %v391_v46 = vpack.c.bf16 %v385_v42, %v384_v39  ;;  %v387_v47 = vmul.f32 %v379_v44, %v363_v43 }
  0xcf   :  { %v604_v48 = vpop.eup %603  ;;  %395 = vst [vmem:[#allocation8 + $0x8] sm:$0xff] %v391_v46  ;;  %v392_v49 = vpack.c.bf16 %v387_v47, %v386_v45 }
  0xd0   :  { %v606_v50 = vpop.eup %605  ;;  %v380_v52 = vadd.f32 1.0, %v604_v48 }
  0xd1   :  { %396 = vst [vmem:[#allocation8 + $0x10] sm:$0xff] %v392_v49  ;;  %v381_v55 = vadd.f32 1.0, %v606_v50 }
  0xd2   :  { %v388_v56 = vmul.f32 %v380_v52, %v364_v51 }
  0xd3   :  { %v389_v54 = vmul.f32 %v381_v55, %v365_v53 }
  0xd5   :  { %v393_v57 = vpack.c.bf16 %v389_v54, %v388_v56 }
  0xd7   :  { %397 = vst [vmem:[#allocation8 + $0x18] sm:$0xff] %v393_v57 }
  0xd8   :  { %410 = dma.vmem_to_hbm [thread:$0]  %s403_s29, 512, %s405_s5, [#allocation4], %s710_s20, %s710_s20, %s711_s21  }
  0xd9   :  { %707 = dma.done.wait [#allocation4], 512  }
  0xda   :  { %708 = vsyncadd [#allocation4], 4294966784 }
  0xdb   :  { %415 = vsyncpa [#allocation3], 1 }
  0xdc   :  { %416 = vsyncpa [#allocation6], 1 }
  0xdd   :  { %417 = vsyncpa [#allocation4], 1 }

// kernel: tpu_custom_call.1
= control target key start
LH: loop header
LB: loop body
LE: loop exit
PB: predicated region body
PF: predicated region fallthrough
CT: control target
= control target key end

     0   :  { %8 = vsyncpa [#allocation3], 0  ;;  %s755_s0 = inlined_call_operand.hbm [shape: bf16[16,128], index: 0, kind: input, shape index: {}]   ;;  %s756_s1 = inlined_call_operand.hbm [shape: bf16[128,512], index: 1, kind: input, shape index: {}]   ;;  %s757_s2 = inlined_call_operand.hbm [shape: f32[1,512], index: 2, kind: input, shape index: {}]   ;;  %s758_s3 = inlined_call_operand.hbm [shape: bf16[16,512], index: 3, kind: output, shape index: {}]  }
   0x1   :  { %9 = vsyncpa [#allocation6], 0  ;;  %s28_s14 = sshll.u32 %s756_s1, 4  ;;  %s29_s14 = int_to_ptr.hbm [resolvable:$true] %s28_s14 }
   0x2   :  { %10 = vsyncpa [#allocation4], 0  ;;  %s709_s15 = smov [#allocation5]   ;;  %s15_s19 = sshll.u32 %s755_s0, 4  ;;  %s16_s19 = int_to_ptr.hbm [resolvable:$true] %s15_s19 }
   0x3   :  { %s30_s16 = sshll.u32 %s709_s15, 4  ;;  %s710_s20 = smov 256   ;;  %s31_s16 = int_to_ptr.vmem [resolvable:$true] %s30_s16 }
   0x4   :  { %s711_s21 = smov 16   ;;  %s712_s22 = smov [#allocation2]  }
   0x5   :  { %36 = dma.hbm_to_vmem [thread:$0]  %s29_s14, 4096, %s31_s16, [#allocation6], %s710_s20, %s710_s20, %s711_s21  }
   0x6   :  { %s17_s23 = sshll.u32 %s712_s22, 4  ;;  %s713_s1 = smov 64   ;;  %s18_s23 = int_to_ptr.vmem [resolvable:$true] %s17_s23 }
   0x7   :  { %s714_s24 = smov 4   ;;  %s42_s27 = sshll.u32 %s757_s2, 4  ;;  %s43_s27 = int_to_ptr.hbm [resolvable:$true] %s42_s27 }
   0x8   :  { %23 = dma.hbm_to_vmem [thread:$0]  %s16_s19, 128, %s18_s23, [#allocation3], %s713_s1, %s713_s1, %s714_s24  }
   0x9   :  { %s715_s28 = smov [#allocation7]  }
   0xa   :  { %s44_s0 = sshll.u32 %s715_s28, 4  ;;  %s45_s0 = int_to_ptr.vmem [resolvable:$true] %s44_s0 }
   0xb   :  { %47 = dma.hbm_to_vmem [thread:$0]  %s43_s27, 64, %s45_s0, [#allocation6]  }
   0xc   :  { %703 = dma.done.wait [#allocation3], 128  }
   0xd   :  { %704 = vsyncadd [#allocation3], 4294967168 }
   0xe   :  { %705 = dma.done.wait [#allocation6], 4160  }
   0xf   :  { %706 = vsyncadd [#allocation6], 4294963136  ;;  %v536_v0 = vld [vmem:[#allocation5 + $0xe0] sm:$0xf]  ;;  %v581_v1 = vld [vmem:[#allocation5 + $0xec] sm:$0xf0] }
  0x10   :  { %v579_v2 = vld [vmem:[#allocation5 + $0xe4] sm:$0xf]  ;;  %v537_v3 = vor.u32 %v581_v1, %v536_v0  ;;  %v538_v4 = vld [vmem:[#allocation5 + $0xf0] sm:$0xf0]  ;;  %v544_v5 = vld [vmem:[#allocation5 + $0xe8] sm:$0xf] }
  0x11   :  { %v582_v6 = vld [vmem:[#allocation5 + $0xf4] sm:$0xf0]  ;;  %v541_v7 = vor.u32 %v579_v2, %v538_v4  ;;  %v580_v9 = vld [vmem:[#allocation5 + $0xec] sm:$0xf]  ;;  %v546_v10 = vld [vmem:[#allocation5 + $0xf8] sm:$0xf0] }
  0x12   :  { %v545_v8 = vor.u32 %v582_v6, %v544_v5  ;;  %v520_v11 = vld [vmem:[#allocation5 + $0xc0] sm:$0xf]  ;;  %270 = vmatpush.bf16.msra.mxu0 %v537_v3  ;;  %v549_v12 = vor.u32 %v580_v9, %v546_v10  ;;  %v577_v13 = vld [vmem:[#allocation5 + $0xcc] sm:$0xf0]  ;;  %v575_v14 = vld [vmem:[#allocation5 + $0xc4] sm:$0xf] }
  0x13   :  { %v522_v15 = vld [vmem:[#allocation5 + $0xd0] sm:$0xf0]  ;;  %284 = vmatpush.bf16.msra.mxu1 %v541_v7  ;;  %v521_v16 = vor.u32 %v577_v13, %v520_v11  ;;  %v528_v18 = vld [vmem:[#allocation5 + $0xc8] sm:$0xf]  ;;  %v578_v19 = vld [vmem:[#allocation5 + $0xd4] sm:$0xf0] }
  0x14   :  { %298 = vmatpush.bf16.msra.mxu2 %v545_v8  ;;  %v525_v17 = vor.u32 %v575_v14, %v522_v15  ;;  %v576_v20 = vld [vmem:[#allocation5 + $0xcc] sm:$0xf]  ;;  %312 = vmatpush.bf16.msra.mxu3 %v549_v12  ;;  %v529_v21 = vor.u32 %v578_v19, %v528_v18  ;;  %v530_v22 = vld [vmem:[#allocation5 + $0xd8] sm:$0xf0]  ;;  %v504_v23 = vld [vmem:[#allocation5 + $0xa0] sm:$0xf] }
  0x15   :  { %v573_v24 = vld [vmem:[#allocation5 + $0xac] sm:$0xf0]  ;;  %v533_v25 = vor.u32 %v576_v20, %v530_v22  ;;  %v571_v26 = vld [vmem:[#allocation5 + $0xa4] sm:$0xf]  ;;  %v506_v27 = vld [vmem:[#allocation5 + $0xb0] sm:$0xf0] }
  0x16   :  { %v512_v28 = vld [vmem:[#allocation5 + $0xa8] sm:$0xf]  ;;  %271 = vmatpush.bf16.msra.mxu0 %v521_v16  ;;  %v505_v29 = vor.u32 %v573_v24, %v504_v23  ;;  %v574_v30 = vld [vmem:[#allocation5 + $0xb4] sm:$0xf0]  ;;  %v572_v31 = vld [vmem:[#allocation5 + $0xac] sm:$0xf]  ;;  %v509_v33 = vor.u32 %v571_v26, %v506_v27 }
  0x17   :  { %v514_v32 = vld [vmem:[#allocation5 + $0xb8] sm:$0xf0]  ;;  %285 = vmatpush.bf16.msra.mxu1 %v525_v17  ;;  %v513_v34 = vor.u32 %v574_v30, %v512_v28  ;;  %v488_v35 = vld [vmem:[#allocation5 + $0x80] sm:$0xf]  ;;  %v569_v36 = vld [vmem:[#allocation5 + $0x8c] sm:$0xf0] }
  0x18   :  { %299 = vmatpush.bf16.msra.mxu2 %v529_v21  ;;  %v567_v37 = vld [vmem:[#allocation5 + $0x84] sm:$0xf]  ;;  %313 = vmatpush.bf16.msra.mxu3 %v533_v25  ;;  %v517_v38 = vor.u32 %v572_v31, %v514_v32  ;;  %v490_v39 = vld [vmem:[#allocation5 + $0x90] sm:$0xf0]  ;;  %v496_v40 = vld [vmem:[#allocation5 + $0x88] sm:$0xf]  ;;  %v489_v44 = vor.u32 %v569_v36, %v488_v35 }
  0x19   :  { %v570_v41 = vld [vmem:[#allocation5 + $0x94] sm:$0xf0]  ;;  %v568_v42 = vld [vmem:[#allocation5 + $0x8c] sm:$0xf]  ;;  %v498_v43 = vld [vmem:[#allocation5 + $0x98] sm:$0xf0]  ;;  %v493_v45 = vor.u32 %v567_v37, %v490_v39 }
  0x1a   :  { %272 = vmatpush.bf16.msra.mxu0 %v505_v29  ;;  %v497_v46 = vor.u32 %v570_v41, %v496_v40  ;;  %v472_v47 = vld [vmem:[#allocation5 + $0x60] sm:$0xf]  ;;  %v565_v48 = vld [vmem:[#allocation5 + $0x6c] sm:$0xf0]  ;;  %v563_v49 = vld [vmem:[#allocation5 + $0x64] sm:$0xf]  ;;  %v501_v50 = vor.u32 %v568_v42, %v498_v43 }
  0x1b   :  { %286 = vmatpush.bf16.msra.mxu1 %v509_v33  ;;  %v474_v51 = vld [vmem:[#allocation5 + $0x70] sm:$0xf0]  ;;  %v480_v52 = vld [vmem:[#allocation5 + $0x68] sm:$0xf]  ;;  %v566_v53 = vld [vmem:[#allocation5 + $0x74] sm:$0xf0]  ;;  %v473_v56 = vor.u32 %v565_v48, %v472_v47 }
  0x1c   :  { %300 = vmatpush.bf16.msra.mxu2 %v513_v34  ;;  %314 = vmatpush.bf16.msra.mxu3 %v517_v38  ;;  %v564_v54 = vld [vmem:[#allocation5 + $0x6c] sm:$0xf]  ;;  %v482_v55 = vld [vmem:[#allocation5 + $0x78] sm:$0xf0]  ;;  %v477_v57 = vor.u32 %v563_v49, %v474_v51  ;;  %v481_v58 = vor.u32 %v566_v53, %v480_v52  ;;  %v456_v59 = vld [vmem:[#allocation5 + $0x40] sm:$0xf] }
  0x1d   :  { %v561_v60 = vld [vmem:[#allocation5 + $0x4c] sm:$0xf0]  ;;  %v559_v61 = vld [vmem:[#allocation5 + $0x44] sm:$0xf]  ;;  %v485_v62 = vor.u32 %v564_v54, %v482_v55  ;;  %v458_v63 = vld [vmem:[#allocation5 + $0x50] sm:$0xf0] }
  0x1e   :  { %273 = vmatpush.bf16.msra.mxu0 %v489_v44  ;;  %v464_v0 = vld [vmem:[#allocation5 + $0x48] sm:$0xf]  ;;  %v562_v1 = vld [vmem:[#allocation5 + $0x54] sm:$0xf0]  ;;  %v560_v2 = vld [vmem:[#allocation5 + $0x4c] sm:$0xf]  ;;  %v457_v4 = vor.u32 %v561_v60, %v456_v59  ;;  %v461_v5 = vor.u32 %v559_v61, %v458_v63 }
  0x1f   :  { %287 = vmatpush.bf16.msra.mxu1 %v493_v45  ;;  %v466_v3 = vld [vmem:[#allocation5 + $0x58] sm:$0xf0]  ;;  %v465_v6 = vor.u32 %v562_v1, %v464_v0  ;;  %v440_v7 = vld [vmem:[#allocation5 + $0x20] sm:$0xf]  ;;  %v557_v8 = vld [vmem:[#allocation5 + $0x2c] sm:$0xf0] }
  0x20   :  { %301 = vmatpush.bf16.msra.mxu2 %v497_v46  ;;  %315 = vmatpush.bf16.msra.mxu3 %v501_v50  ;;  %v555_v9 = vld [vmem:[#allocation5 + $0x24] sm:$0xf]  ;;  %v469_v10 = vor.u32 %v560_v2, %v466_v3  ;;  %v442_v11 = vld [vmem:[#allocation5 + $0x30] sm:$0xf0]  ;;  %v448_v12 = vld [vmem:[#allocation5 + $0x28] sm:$0xf]  ;;  %v441_v16 = vor.u32 %v557_v8, %v440_v7 }
  0x21   :  { %v558_v13 = vld [vmem:[#allocation5 + $0x34] sm:$0xf0]  ;;  %v556_v14 = vld [vmem:[#allocation5 + $0x2c] sm:$0xf]  ;;  %v450_v15 = vld [vmem:[#allocation5 + $0x38] sm:$0xf0]  ;;  %v445_v17 = vor.u32 %v555_v9, %v442_v11 }
  0x22   :  { %274 = vmatpush.bf16.msra.mxu0 %v473_v56  ;;  %v449_v18 = vor.u32 %v558_v13, %v448_v12  ;;  %v424_v19 = vld [vmem:[#allocation5] sm:$0xf]  ;;  %v553_v20 = vld [vmem:[#allocation5 + $0xc] sm:$0xf0]  ;;  %v551_v21 = vld [vmem:[#allocation5 + $0x4] sm:$0xf]  ;;  %v453_v22 = vor.u32 %v556_v14, %v450_v15 }
  0x23   :  { %288 = vmatpush.bf16.msra.mxu1 %v477_v57  ;;  %v426_v23 = vld [vmem:[#allocation5 + $0x10] sm:$0xf0]  ;;  %v432_v24 = vld [vmem:[#allocation5 + $0x8] sm:$0xf]  ;;  %v554_v25 = vld [vmem:[#allocation5 + $0x14] sm:$0xf0]  ;;  %v425_v28 = vor.u32 %v553_v20, %v424_v19 }
  0x24   :  { %302 = vmatpush.bf16.msra.mxu2 %v481_v58  ;;  %316 = vmatpush.bf16.msra.mxu3 %v485_v62  ;;  %v552_v26 = vld [vmem:[#allocation5 + $0xc] sm:$0xf]  ;;  %v434_v27 = vld [vmem:[#allocation5 + $0x18] sm:$0xf0]  ;;  %v429_v29 = vor.u32 %v551_v21, %v426_v23  ;;  %v433_v30 = vor.u32 %v554_v25, %v432_v24  ;;  %v94_v33 = vld [vmem:[#allocation7] sm:$0xf] }
  0x25   :  { %v437_v31 = vor.u32 %v552_v26, %v434_v27  ;;  %v550_v32 = vld [vmem:[#allocation2] sm:$0xff]  ;;  %v96_v34 = vperm.slane %v94_v33, 0  ;;  %v97_v35 = vperm.slane %v94_v33, 1  ;;  %v98_v42 = vperm.slane %v94_v33, 2  ;;  %s716_s2 = smov [#allocation8]   ;;  %s404_s5 = sshll.u32 %s758_s3, 4  ;;  %s405_s5 = int_to_ptr.hbm [resolvable:$true] %s404_s5 }
  0x26   :  { %275 = vmatpush.bf16.msra.mxu0 %v457_v4  ;;  %v99_v44 = vperm.slane %v94_v33, 3  ;;  %s402_s29 = sshll.u32 %s716_s2, 4  ;;  %s403_s29 = int_to_ptr.vmem [resolvable:$true] %s402_s29 }
  0x27   :  { %289 = vmatpush.bf16.msra.mxu1 %v461_v5 }
  0x28   :  { %303 = vmatpush.bf16.msra.mxu2 %v465_v6  ;;  %317 = vmatpush.bf16.msra.mxu3 %v469_v10 }
  0x2a   :  { %276 = vmatpush.bf16.msra.mxu0 %v441_v16 }
  0x2b   :  { %290 = vmatpush.bf16.msra.mxu1 %v445_v17 }
  0x2c   :  { %304 = vmatpush.bf16.msra.mxu2 %v449_v18  ;;  %318 = vmatpush.bf16.msra.mxu3 %v453_v22 }
  0x2e   :  { %277 = vmatpush.bf16.msra.mxu0 %v425_v28 }
  0x2f   :  { %291 = vmatpush.bf16.msra.mxu1 %v429_v29 }
  0x30   :  { %305 = vmatpush.bf16.msra.mxu2 %v433_v30  ;;  %319 = vmatpush.bf16.msra.mxu3 %v437_v31 }
  0x31   :  { %278 = vmatmul.bf16.vlgmr.msra.gmra.mxu0 %v550_v32 }
  0x32   :  { %292 = vmatmul.bf16.vlgmr.msra.gmra.mxu1 %v550_v32 }
  0x33   :  { %306 = vmatmul.bf16.vlgmr.msra.gmra.mxu2 %v550_v32  ;;  %320 = vmatmul.bf16.vlgmr.msra.gmra.mxu3 %v550_v32 }
  0xae   :  { %v279_v36 = vpop.f32.mrf.mxu0 }
  0xaf   :  { %v280_v37 = vadd.f32 %v279_v36, %v96_v34  ;;  %v293_v38 = vpop.f32.mrf.mxu1 }
  0xb0   :  { %v294_v39 = vadd.f32 %v293_v38, %v97_v35 }
  0xb1   :  { %v326_v40 = vmul.f32 %v280_v37, %v280_v37  ;;  %v358_v11 = vmul.f32 0.5, %v280_v37 }
  0xb2   :  { %v327_v41 = vmul.f32 %v294_v39, %v294_v39  ;;  %v359_v19 = vmul.f32 0.5, %v294_v39 }
  0xb3   :  { %v334_v43 = vmul.f32 0.035677407, %v326_v40 }
  0xb4   :  { %v335_v45 = vmul.f32 0.035677407, %v327_v41 }
  0xb5   :  { %v342_v46 = vadd.f32 0.7978846, %v334_v43 }
  0xb6   :  { %v307_v47 = vpop.f32.mrf.mxu2  ;;  %v343_v48 = vadd.f32 0.7978846, %v335_v45  ;;  %v321_v50 = vpop.f32.mrf.mxu3 }
  0xb7   :  { %v308_v49 = vadd.f32 %v307_v47, %v98_v42  ;;  %v281_v51 = vpop.f32.mrf.mxu0  ;;  %v350_v52 = vmul.f32 %v342_v46, %v280_v37  ;;  %v322_v53 = vadd.f32 %v321_v50, %v99_v44  ;;  %v295_v55 = vpop.f32.mrf.mxu1 }
  0xb8   :  { %v282_v54 = vadd.f32 %v281_v51, %v96_v34  ;;  %v351_v56 = vmul.f32 %v343_v48, %v294_v39  ;;  %v296_v58 = vadd.f32 %v295_v55, %v97_v35 }
  0xb9   :  { %v328_v57 = vmul.f32 %v308_v49, %v308_v49  ;;  %591 = vtanh.f32 %v350_v52  ;;  %v329_v59 = vmul.f32 %v322_v53, %v322_v53  ;;  %v360_v32 = vmul.f32 0.5, %v308_v49 }
  0xba   :  { %v330_v60 = vmul.f32 %v282_v54, %v282_v54  ;;  %593 = vtanh.f32 %v351_v56  ;;  %v331_v62 = vmul.f32 %v296_v58, %v296_v58  ;;  %v361_v36 = vmul.f32 0.5, %v322_v53 }
  0xbb   :  { %v336_v61 = vmul.f32 0.035677407, %v328_v57  ;;  %v337_v63 = vmul.f32 0.035677407, %v329_v59  ;;  %v362_v40 = vmul.f32 0.5, %v282_v54  ;;  %v363_v43 = vmul.f32 0.5, %v296_v58 }
  0xbc   :  { %v338_v0 = vmul.f32 0.035677407, %v330_v60  ;;  %v339_v2 = vmul.f32 0.035677407, %v331_v62 }
  0xbd   :  { %v344_v1 = vadd.f32 0.7978846, %v336_v61  ;;  %v345_v3 = vadd.f32 0.7978846, %v337_v63 }
  0xbe   :  { %v346_v4 = vadd.f32 0.7978846, %v338_v0  ;;  %v309_v5 = vpop.f32.mrf.mxu2  ;;  %v347_v7 = vadd.f32 0.7978846, %v339_v2  ;;  %v323_v9 = vpop.f32.mrf.mxu3 }
  0xbf   :  { %v352_v6 = vmul.f32 %v344_v1, %v308_v49  ;;  %v310_v8 = vadd.f32 %v309_v5, %v98_v42  ;;  %v592_v10 = vpop.eup %591  ;;  %v353_v12 = vmul.f32 %v345_v3, %v322_v53  ;;  %v324_v14 = vadd.f32 %v323_v9, %v99_v44 }
  0xc0   :  { %v354_v13 = vmul.f32 %v346_v4, %v282_v54  ;;  %v594_v15 = vpop.eup %593  ;;  %v374_v16 = vadd.f32 1.0, %v592_v10  ;;  %v355_v17 = vmul.f32 %v347_v7, %v296_v58 }
  0xc1   :  { %595 = vtanh.f32 %v352_v6  ;;  %v332_v18 = vmul.f32 %v310_v8, %v310_v8  ;;  %v375_v20 = vadd.f32 1.0, %v594_v15  ;;  %v333_v21 = vmul.f32 %v324_v14, %v324_v14 }
  0xc2   :  { %597 = vtanh.f32 %v353_v12  ;;  %v382_v22 = vmul.f32 %v374_v16, %v358_v11  ;;  %v364_v51 = vmul.f32 0.5, %v310_v8  ;;  %v365_v53 = vmul.f32 0.5, %v324_v14 }
  0xc3   :  { %599 = vtanh.f32 %v354_v13  ;;  %v340_v23 = vmul.f32 0.035677407, %v332_v18  ;;  %v383_v24 = vmul.f32 %v375_v20, %v359_v19  ;;  %v341_v25 = vmul.f32 0.035677407, %v333_v21 }
  0xc4   :  { %601 = vtanh.f32 %v355_v17 }
  0xc5   :  { %v348_v26 = vadd.f32 0.7978846, %v340_v23  ;;  %v390_v27 = vpack.c.bf16 %v383_v24, %v382_v22  ;;  %v349_v28 = vadd.f32 0.7978846, %v341_v25 }
  0xc7   :  { %v596_v29 = vpop.eup %595  ;;  %v356_v30 = vmul.f32 %v348_v26, %v310_v8  ;;  %394 = vst [vmem:[#allocation8] sm:$0xff] %v390_v27  ;;  %v357_v34 = vmul.f32 %v349_v28, %v324_v14 }
  0xc8   :  { %v598_v31 = vpop.eup %597  ;;  %v376_v33 = vadd.f32 1.0, %v596_v29 }
  0xc9   :  { %v600_v35 = vpop.eup %599  ;;  %v377_v37 = vadd.f32 1.0, %v598_v31  ;;  %603 = vtanh.f32 %v356_v30 }
  0xca   :  { %v602_v38 = vpop.eup %601  ;;  %v384_v39 = vmul.f32 %v376_v33, %v360_v32  ;;  %v378_v41 = vadd.f32 1.0, %v600_v35  ;;  %605 = vtanh.f32 %v357_v34 }
  0xcb   :  { %v385_v42 = vmul.f32 %v377_v37, %v361_v36  ;;  %v379_v44 = vadd.f32 1.0, %v602_v38 }
  0xcc   :  { %v386_v45 = vmul.f32 %v378_v41, %v362_v40 }
  0xcd   :  { %v391_v46 = vpack.c.bf16 %v385_v42, %v384_v39  ;;  %v387_v47 = vmul.f32 %v379_v44, %v363_v43 }
  0xcf   :  { %v604_v48 = vpop.eup %603  ;;  %395 = vst [vmem:[#allocation8 + $0x8] sm:$0xff] %v391_v46  ;;  %v392_v49 = vpack.c.bf16 %v387_v47, %v386_v45 }
  0xd0   :  { %v606_v50 = vpop.eup %605  ;;  %v380_v52 = vadd.f32 1.0, %v604_v48 }
  0xd1   :  { %396 = vst [vmem:[#allocation8 + $0x10] sm:$0xff] %v392_v49  ;;  %v381_v55 = vadd.f32 1.0, %v606_v50 }
  0xd2   :  { %v388_v56 = vmul.f32 %v380_v52, %v364_v51 }
  0xd3   :  { %v389_v54 = vmul.f32 %v381_v55, %v365_v53 }
  0xd5   :  { %v393_v57 = vpack.c.bf16 %v389_v54, %v388_v56 }
  0xd7   :  { %397 = vst [vmem:[#allocation8 + $0x18] sm:$0xff] %v393_v57 }
  0xd8   :  { %410 = dma.vmem_to_hbm [thread:$0]  %s403_s29, 512, %s405_s5, [#allocation4], %s710_s20, %s710_s20, %s711_s21  }
  0xd9   :  { %707 = dma.done.wait [#allocation4], 512  }
  0xda   :  { %708 = vsyncadd [#allocation4], 4294966784 }
  0xdb   :  { %415 = vsyncpa [#allocation3], 1 }
  0xdc   :  { %416 = vsyncpa [#allocation6], 1 }
  0xdd   :  { %417 = vsyncpa [#allocation4], 1 }

</bundles_post_ra>
